<compile_context>
chip_gen: v6e
topology: v6e:2x2x1
jax: 0.10.0
libtpu: 0.0.40
codegen_flags: <defaults>
</compile_context>

<pallas_src>
import jax
import jax.numpy as jnp
import numpy as np
from jax import lax
from jax.experimental import pallas as pl
from jax.experimental.pallas import tpu as pltpu


def _make_kernel(c, h, w, pad, nb, out_dtype):
    """Per-grid-step kernel: shift-and-clamp nb samples with one-hot matmuls."""
    mm_dtype = out_dtype if jnp.issubdtype(out_dtype, jnp.floating) else jnp.float32

    def kernel(shift_ref, x_ref, o_ref):
        # shift_ref: (2, n_total) int32 in SMEM (scalar-prefetched),
        #            row 0 = width shift sx, row 1 = height shift sy, in [0, 2*pad].
        # x_ref:     (nb, c, h, w) unpadded input block in VMEM (auto-pipelined).
        # o_ref:     (nb, c, h, w) output block in VMEM (auto-pipelined).
        base = pl.program_id(0) * nb

        # Hoisted 2-D iotas (JAX does not CSE broadcasts; build once per step).
        row_out = lax.broadcasted_iota(jnp.int32, (h, h), 0)  # output row y
        row_src = lax.broadcasted_iota(jnp.int32, (h, h), 1)  # source row r
        col_src = lax.broadcasted_iota(jnp.int32, (w, w), 0)  # source col
        col_out = lax.broadcasted_iota(jnp.int32, (w, w), 1)  # output col x

        def body(j, carry):
            i = base + j
            dx = shift_ref[0, i] - pad  # width shift  in [-pad, pad]
            dy = shift_ref[1, i] - pad  # height shift in [-pad, pad]
            # One-hot "shift + replicate-clamp" selection matrices:
            #   rsel[y, r] = (r == clamp(y + dy, 0, h-1))
            #   csel[r, x] = (r == clamp(x + dx, 0, w-1))
            # Exactly one 1 per output row/col, so the matmuls are bit-exact
            # gathers (replicate padding folded into the clamp).
            rsel = (row_src == jnp.clip(row_out + dy, 0, h - 1)).astype(mm_dtype)
            csel = (col_src == jnp.clip(col_out + dx, 0, w - 1)).astype(mm_dtype)
            for ch in range(c):  # c is small and static
                img = x_ref[j, ch].astype(mm_dtype)                 # (h, w)
                rows = jnp.dot(rsel, img, preferred_element_type=jnp.float32)
                out = jnp.dot(rows.astype(mm_dtype), csel,
                              preferred_element_type=jnp.float32)
                o_ref[j, ch] = out.astype(out_dtype)
            return carry

        lax.fori_loop(0, nb, body, 0)

    return kernel


def _pick_batch_block(n, bytes_per_sample, max_block_bytes=8 << 20, min_grid_steps=4):
    """Samples per grid step.

    The only hard limit is the VMEM byte budget for one block (the old
    max_nb=16 cap is gone).  For large batches keep >= min_grid_steps grid
    steps so the "parallel" batch axis can shard across TensorCores (v7x) and
    the pipeline has something to overlap.  Returns (nb, n_batch_pad).
    """
    cap = max(1, max_block_bytes // max(1, bytes_per_sample))
    if n >= 2 * min_grid_steps:
        cap = min(cap, -(-n // min_grid_steps))
    cap = min(cap, n)
    nb = cap
    while n % nb:  # prefer the largest divisor of n (no batch padding needed)
        nb -= 1
    if 2 * nb >= cap:
        return nb, 0
    # All divisors of n are tiny (e.g. prime n): keep the big block, pad batch.
    n_pad = -(-n // cap) * cap
    return cap, n_pad - n


def random_shifts_aug(x, shift, pad):
    """Pallas TPU implementation of RandomShiftsAug.forward.

    x:     (..., C, H, W) array, H == W.
    shift: (N, 2) integer per-sample shifts in [0, 2*pad]
           (column 0 = width shift, column 1 = height shift),
           N = prod of leading dims of x.
    """
    shape = x.shape
    x4 = x.reshape((-1,) + shape[-3:])
    n, c, h, w = x4.shape
    assert h == w
    if pad == 0:
        return x

    dtype = x4.dtype
    itemsize = dtype.itemsize

    # Shift table as (2, N) int32 (long axis last keeps the SMEM buffer tiny);
    # clamp so a bad shift can never select out-of-range pixels.
    shift2n = jnp.clip(shift.astype(jnp.int32), 0, 2 * pad).T  # (2, N)

    nb, n_extra = _pick_batch_block(n, c * h * w * itemsize)
    n_total = n + n_extra
    if n_extra:
        # TODO(synk): an in-kernel tail guard would avoid this extra HBM copy
        # for batch sizes whose divisors are all tiny (e.g. prime n).
        x4 = jnp.concatenate([x4, jnp.zeros((n_extra, c, h, w), dtype)], axis=0)
        shift2n = jnp.concatenate([shift2n, jnp.zeros((2, n_extra), jnp.int32)], axis=1)

    block_bytes = nb * c * h * w * itemsize

    grid_spec = pltpu.PrefetchScalarGridSpec(
        num_scalar_prefetch=1,
        grid=(n_total // nb,),
        in_specs=[pl.BlockSpec((nb, c, h, w), lambda b, s: (b, 0, 0, 0))],
        out_specs=pl.BlockSpec((nb, c, h, w), lambda b, s: (b, 0, 0, 0)),
    )

    cost = pl.CostEstimate(
        flops=2 * n_total * c * (h * h * w + h * w * w),
        transcendentals=0,
        bytes_accessed=2 * n_total * c * h * w * itemsize + int(shift2n.size) * 4,
    )

    out = pl.pallas_call(
        _make_kernel(c, h, w, pad, nb, dtype),
        out_shape=jax.ShapeDtypeStruct((n_total, c, h, w), dtype),
        grid_spec=grid_spec,
        compiler_params=pltpu.CompilerParams(
            dimension_semantics=("parallel",),
            vmem_limit_bytes=int(max(32 << 20, 4 * block_bytes + (8 << 20))),
        ),
        cost_estimate=cost,
    )(shift2n, x4)

    if n_extra:
        out = out[:n]
    return out.reshape(shape[:-3] + (c, h, w))


def _reference(x, shift, pad):
    """Pure-JAX reference: clamped-index gather (jit-safe, vectorized)."""
    shape = x.shape
    x4 = x.reshape((-1,) + shape[-3:])
    n, c, h, w = x4.shape
    sx = jnp.clip(shift[:, 0].astype(jnp.int32), 0, 2 * pad) - pad
    sy = jnp.clip(shift[:, 1].astype(jnp.int32), 0, 2 * pad) - pad
    rows = jnp.clip(jnp.arange(h)[None, :] + sy[:, None], 0, h - 1)  # (n, h)
    cols = jnp.clip(jnp.arange(w)[None, :] + sx[:, None], 0, w - 1)  # (n, w)
    out = x4[jnp.arange(n)[:, None, None, None],
             jnp.arange(c)[None, :, None, None],
             rows[:, None, :, None],
             cols[:, None, None, :]]
    return out.reshape(shape[:-3] + (c, h, w))


if __name__ == "__main__":
    pad = 4
    key = jax.random.PRNGKey(0)
    kx, ks = jax.random.split(key)

    # x: (N, C, H, W) = (2, 4, 16, 16)
    x = jax.random.normal(kx, (2, 4, 16, 16), dtype=jnp.float32)

    # Per-sample integer shifts in [0, 2*pad], as torch.randint does.
    # TODO(synk): torch's RNG stream is not reproducible in JAX; shifts are
    # drawn from a JAX PRNGKey instead (the torch module draws them internally).
    n = x.shape[0]
    shift = jax.random.randint(ks, (n, 2), 0, 2 * pad + 1, dtype=jnp.int32)

    out = random_shifts_aug(x, shift, pad)
    out = jax.block_until_ready(out)

    ref = _reference(x, shift, pad)
    np.testing.assert_allclose(np.asarray(out), np.asarray(ref), rtol=1e-6, atol=1e-6)

    print("KERNEL_OK")
</pallas_src>

<mosaic_0001>
module attributes {stable_mosaic.version = 11 : i64} {
  func.func @kernel(%arg0: i32, %arg1: memref<2x2xi32, #tpu.memory_space<smem>>, %arg2: memref<2x4x16x16xf32, #tpu.memory_space<vmem>>, %arg3: memref<2x4x16x16xf32, #tpu.memory_space<vmem>>) attributes {dimension_semantics = [#tpu.dimension_semantics<parallel>], iteration_bounds = array<i64: 1>, scalar_prefetch = 1 : i64, scratch_operands = 0 : i64, tpu.core_type = #tpu.core_type<tc>, window_params = [{transform_indices = @transform_0, window_bounds = array<i64: 2, 4, 16, 16>}, {transform_indices = @transform_1, window_bounds = array<i64: 2, 4, 16, 16>}]} {
    %c2_i32 = arith.constant 2 : i32
    %0 = arith.muli %arg0, %c2_i32 : i32
    %1 = tpu.iota {dimensions = array<i32: 0>} : vector<16x16xi32>
    %2 = tpu.iota {dimensions = array<i32: 1>} : vector<16x16xi32>
    %3 = tpu.iota {dimensions = array<i32: 0>} : vector<16x16xi32>
    %4 = tpu.iota {dimensions = array<i32: 1>} : vector<16x16xi32>
    %c0_i32 = arith.constant 0 : i32
    %c2_i32_0 = arith.constant 2 : i32
    %5 = arith.addi %c0_i32, %c2_i32_0 : i32
    %c1_i32 = arith.constant 1 : i32
    scf.for %arg4 = %c0_i32 to %5 step %c1_i32  : i32 {
      %6 = arith.addi %0, %arg4 : i32
      %c0 = arith.constant 0 : index
      %7 = arith.index_cast %6 : i32 to index
      %8 = memref.load %arg1[%c0, %7] : memref<2x2xi32, #tpu.memory_space<smem>>
      %c4_i32 = arith.constant 4 : i32
      %9 = arith.subi %8, %c4_i32 : i32
      %c1 = arith.constant 1 : index
      %10 = arith.index_cast %6 : i32 to index
      %11 = memref.load %arg1[%c1, %10] : memref<2x2xi32, #tpu.memory_space<smem>>
      %c4_i32_2 = arith.constant 4 : i32
      %12 = arith.subi %11, %c4_i32_2 : i32
      %13 = vector.broadcast %12 : i32 to vector<16x16xi32>
      %14 = arith.addi %1, %13 : vector<16x16xi32>
      %c0_i32_3 = arith.constant 0 : i32
      %c15_i32 = arith.constant 15 : i32
      %15 = vector.broadcast %c0_i32_3 : i32 to vector<16x16xi32>
      %16 = arith.maxsi %15, %14 : vector<16x16xi32>
      %17 = vector.broadcast %c15_i32 : i32 to vector<16x16xi32>
      %18 = arith.minsi %17, %16 : vector<16x16xi32>
      %19 = arith.cmpi eq, %2, %18 : vector<16x16xi32>
      %20 = arith.extui %19 : vector<16x16xi1> to vector<16x16xi32>
      %21 = arith.sitofp %20 : vector<16x16xi32> to vector<16x16xf32>
      %22 = vector.broadcast %9 : i32 to vector<16x16xi32>
      %23 = arith.addi %4, %22 : vector<16x16xi32>
      %c0_i32_4 = arith.constant 0 : i32
      %c15_i32_5 = arith.constant 15 : i32
      %24 = vector.broadcast %c0_i32_4 : i32 to vector<16x16xi32>
      %25 = arith.maxsi %24, %23 : vector<16x16xi32>
      %26 = vector.broadcast %c15_i32_5 : i32 to vector<16x16xi32>
      %27 = arith.minsi %26, %25 : vector<16x16xi32>
      %28 = arith.cmpi eq, %3, %27 : vector<16x16xi32>
      %29 = arith.extui %28 : vector<16x16xi1> to vector<16x16xi32>
      %30 = arith.sitofp %29 : vector<16x16xi32> to vector<16x16xf32>
      %31 = arith.index_cast %arg4 : i32 to index
      %c0_6 = arith.constant 0 : index
      %c0_7 = arith.constant 0 : index
      %c0_8 = arith.constant 0 : index
      %32 = vector.load %arg2[%31, %c0_6, %c0_7, %c0_8] : memref<2x4x16x16xf32, #tpu.memory_space<vmem>>, vector<1x1x16x16xf32>
      %33 = vector.shape_cast %32 : vector<1x1x16x16xf32> to vector<16x16xf32>
      %cst = arith.constant dense<0.000000e+00> : vector<16x16xf32>
      %34 = tpu.matmul %21, %33, %cst {dimension_numbers = #tpu.dot_dimension_numbers<[1], [0], [0], [1], [0, 0, 1, 1], [], []>} : vector<16x16xf32>, vector<16x16xf32>, vector<16x16xf32> -> vector<16x16xf32>
      %cst_9 = arith.constant dense<0.000000e+00> : vector<16x16xf32>
      %35 = tpu.matmul %34, %30, %cst_9 {dimension_numbers = #tpu.dot_dimension_numbers<[1], [0], [0], [1], [0, 0, 1, 1], [], []>} : vector<16x16xf32>, vector<16x16xf32>, vector<16x16xf32> -> vector<16x16xf32>
      %36 = arith.index_cast %arg4 : i32 to index
      %c0_10 = arith.constant 0 : index
      %c0_11 = arith.constant 0 : index
      %c0_12 = arith.constant 0 : index
      %37 = vector.load %arg3[%36, %c0_10, %c0_11, %c0_12] : memref<2x4x16x16xf32, #tpu.memory_space<vmem>>, vector<1x1x16x16xf32>
      %38 = vector.shape_cast %37 : vector<1x1x16x16xf32> to vector<16x16xf32>
      %39 = vector.shape_cast %35 : vector<16x16xf32> to vector<1x1x16x16xf32>
      tpu.vector_store %arg3[%36, %c0_10, %c0_11, %c0_12], %39 {strides = array<i32>} : memref<2x4x16x16xf32, #tpu.memory_space<vmem>>, vector<1x1x16x16xf32>,
      %40 = arith.index_cast %arg4 : i32 to index
      %c1_13 = arith.constant 1 : index
      %c0_14 = arith.constant 0 : index
      %c0_15 = arith.constant 0 : index
      %41 = vector.load %arg2[%40, %c1_13, %c0_14, %c0_15] : memref<2x4x16x16xf32, #tpu.memory_space<vmem>>, vector<1x1x16x16xf32>
      %42 = vector.shape_cast %41 : vector<1x1x16x16xf32> to vector<16x16xf32>
      %cst_16 = arith.constant dense<0.000000e+00> : vector<16x16xf32>
      %43 = tpu.matmul %21, %42, %cst_16 {dimension_numbers = #tpu.dot_dimension_numbers<[1], [0], [0], [1], [0, 0, 1, 1], [], []>} : vector<16x16xf32>, vector<16x16xf32>, vector<16x16xf32> -> vector<16x16xf32>
      %cst_17 = arith.constant dense<0.000000e+00> : vector<16x16xf32>
      %44 = tpu.matmul %43, %30, %cst_17 {dimension_numbers = #tpu.dot_dimension_numbers<[1], [0], [0], [1], [0, 0, 1, 1], [], []>} : vector<16x16xf32>, vector<16x16xf32>, vector<16x16xf32> -> vector<16x16xf32>
      %45 = arith.index_cast %arg4 : i32 to index
      %c1_18 = arith.constant 1 : index
      %c0_19 = arith.constant 0 : index
      %c0_20 = arith.constant 0 : index
      %46 = vector.load %arg3[%45, %c1_18, %c0_19, %c0_20] : memref<2x4x16x16xf32, #tpu.memory_space<vmem>>, vector<1x1x16x16xf32>
      %47 = vector.shape_cast %46 : vector<1x1x16x16xf32> to vector<16x16xf32>
      %48 = vector.shape_cast %44 : vector<16x16xf32> to vector<1x1x16x16xf32>
      tpu.vector_store %arg3[%45, %c1_18, %c0_19, %c0_20], %48 {strides = array<i32>} : memref<2x4x16x16xf32, #tpu.memory_space<vmem>>, vector<1x1x16x16xf32>,
      %49 = arith.index_cast %arg4 : i32 to index
      %c2 = arith.constant 2 : index
      %c0_21 = arith.constant 0 : index
      %c0_22 = arith.constant 0 : index
      %50 = vector.load %arg2[%49, %c2, %c0_21, %c0_22] : memref<2x4x16x16xf32, #tpu.memory_space<vmem>>, vector<1x1x16x16xf32>
      %51 = vector.shape_cast %50 : vector<1x1x16x16xf32> to vector<16x16xf32>
      %cst_23 = arith.constant dense<0.000000e+00> : vector<16x16xf32>
      %52 = tpu.matmul %21, %51, %cst_23 {dimension_numbers = #tpu.dot_dimension_numbers<[1], [0], [0], [1], [0, 0, 1, 1], [], []>} : vector<16x16xf32>, vector<16x16xf32>, vector<16x16xf32> -> vector<16x16xf32>
      %cst_24 = arith.constant dense<0.000000e+00> : vector<16x16xf32>
      %53 = tpu.matmul %52, %30, %cst_24 {dimension_numbers = #tpu.dot_dimension_numbers<[1], [0], [0], [1], [0, 0, 1, 1], [], []>} : vector<16x16xf32>, vector<16x16xf32>, vector<16x16xf32> -> vector<16x16xf32>
      %54 = arith.index_cast %arg4 : i32 to index
      %c2_25 = arith.constant 2 : index
      %c0_26 = arith.constant 0 : index
      %c0_27 = arith.constant 0 : index
      %55 = vector.load %arg3[%54, %c2_25, %c0_26, %c0_27] : memref<2x4x16x16xf32, #tpu.memory_space<vmem>>, vector<1x1x16x16xf32>
      %56 = vector.shape_cast %55 : vector<1x1x16x16xf32> to vector<16x16xf32>
      %57 = vector.shape_cast %53 : vector<16x16xf32> to vector<1x1x16x16xf32>
      tpu.vector_store %arg3[%54, %c2_25, %c0_26, %c0_27], %57 {strides = array<i32>} : memref<2x4x16x16xf32, #tpu.memory_space<vmem>>, vector<1x1x16x16xf32>,
      %58 = arith.index_cast %arg4 : i32 to index
      %c3 = arith.constant 3 : index
      %c0_28 = arith.constant 0 : index
      %c0_29 = arith.constant 0 : index
      %59 = vector.load %arg2[%58, %c3, %c0_28, %c0_29] : memref<2x4x16x16xf32, #tpu.memory_space<vmem>>, vector<1x1x16x16xf32>
      %60 = vector.shape_cast %59 : vector<1x1x16x16xf32> to vector<16x16xf32>
      %cst_30 = arith.constant dense<0.000000e+00> : vector<16x16xf32>
      %61 = tpu.matmul %21, %60, %cst_30 {dimension_numbers = #tpu.dot_dimension_numbers<[1], [0], [0], [1], [0, 0, 1, 1], [], []>} : vector<16x16xf32>, vector<16x16xf32>, vector<16x16xf32> -> vector<16x16xf32>
      %cst_31 = arith.constant dense<0.000000e+00> : vector<16x16xf32>
      %62 = tpu.matmul %61, %30, %cst_31 {dimension_numbers = #tpu.dot_dimension_numbers<[1], [0], [0], [1], [0, 0, 1, 1], [], []>} : vector<16x16xf32>, vector<16x16xf32>, vector<16x16xf32> -> vector<16x16xf32>
      %63 = arith.index_cast %arg4 : i32 to index
      %c3_32 = arith.constant 3 : index
      %c0_33 = arith.constant 0 : index
      %c0_34 = arith.constant 0 : index
      %64 = vector.load %arg3[%63, %c3_32, %c0_33, %c0_34] : memref<2x4x16x16xf32, #tpu.memory_space<vmem>>, vector<1x1x16x16xf32>
      %65 = vector.shape_cast %64 : vector<1x1x16x16xf32> to vector<16x16xf32>
      %66 = vector.shape_cast %62 : vector<16x16xf32> to vector<1x1x16x16xf32>
      tpu.vector_store %arg3[%63, %c3_32, %c0_33, %c0_34], %66 {strides = array<i32>} : memref<2x4x16x16xf32, #tpu.memory_space<vmem>>, vector<1x1x16x16xf32>,
    }
    %c2_i32_1 = arith.constant 2 : i32
    return
  }
  func.func @transform_0(%arg0: i32, %arg1: memref<2x2xi32, #tpu.memory_space<smem>>) -> (i32, i32, i32, i32) {
    %c0_i32 = arith.constant 0 : i32
    %c0_i32_0 = arith.constant 0 : i32
    %c0_i32_1 = arith.constant 0 : i32
    %c0_i32_2 = arith.constant 0 : i32
    return %arg0, %c0_i32, %c0_i32_0, %c0_i32_1 : i32, i32, i32, i32
  }
  func.func @transform_1(%arg0: i32, %arg1: memref<2x2xi32, #tpu.memory_space<smem>>) -> (i32, i32, i32, i32) {
    %c0_i32 = arith.constant 0 : i32
    %c0_i32_0 = arith.constant 0 : i32
    %c0_i32_1 = arith.constant 0 : i32
    %c0_i32_2 = arith.constant 0 : i32
    return %arg0, %c0_i32, %c0_i32_0, %c0_i32_1 : i32, i32, i32, i32
  }
}

</mosaic_0001>

<bundles_post_ra>
// kernel: tpu_custom_call.1
= control target key start
LH: loop header
LB: loop body
LE: loop exit
PB: predicated region body
PF: predicated region fallthrough
CT: control target
= control target key end

     0   :  { %s1001_s9 = smov [#allocation3]   ;;  %s1142_s0 = inlined_call_operand.hbm [shape: s32[2,2], index: 0, kind: input, shape index: {}]   ;;  %s1143_s1 = inlined_call_operand.hbm [shape: f32[2,4,16,16], index: 1, kind: input, shape index: {}]   ;;  %s1144_s2 = inlined_call_operand.hbm [shape: f32[2,4,16,16], index: 2, kind: output, shape index: {}]  }
   0x1   :  { %8 = dma.hbm_to_smem %s1142_s0, 32, %s1001_s9, [#allocation2] }
   0x2   :  { %991 = dma.done.wait [#allocation2], 32 }
   0x3   :  { %992 = vsyncadd [#allocation2], 4294967264 }
   0x4   :  { %10 = sfence }
   0x5   :  { %11 = vsyncpa [#allocation5], 0 }
   0x6   :  { %12 = vsyncpa [#allocation6], 0  ;;  %s1002_s12 = smov [#allocation4]  }
   0x7   :  { %s18_s13 = sshll.u32 %s1002_s12, 4  ;;  %s19_s13 = int_to_ptr.vmem [resolvable:$true] %s18_s13 }
   0x8   :  { %s955_s14 = scalar_lea.vmem %s19_s13, 2048  ;;  %p960_p1 = scmp.lt.s32.totalorder %s19_s13, %s19_s13 }
   0x9   :  { %p956_p0 = scmp.ne.s32.totalorder %s19_s13, %s955_s14  ;;  %p961_p2 = scmp.lt.s32.totalorder %s955_s14, %s955_s14 }
   0xb   :  { %p962_p3 = por %p961_p2, %p960_p1 }
   0xd   :  { %p963_p4 = pnand %p962_p3, %p956_p0 }
   0xf   :  { %966 = shalt.err (!%p963_p4)
}
  0x10   :  { %s1003_s15 = smov 128   ;;  %s1004_s16 = smov 8  }
  0x11   :  { %24 = dma.hbm_to_vmem [thread:$0]  %s1143_s1, 2048, %s19_s13, [#allocation5], %s1003_s15, %s1003_s15, %s1004_s16  }
  0x12   :  { %993 = dma.done.wait [#allocation5], 2048  }
  0x13   :  { %994 = vsyncadd [#allocation5], 4294965248  ;;  %v29_v0 = vlaneseq  ;;  %s1039_s18 = smov 0  }
  0x15   :  { %v1032_v1 = vshrl.u32 %v29_v0, 7  ;;  %v1034_v2 = vand.u32 127, %v29_v0 }
  0x17   :  { %v1037_v3 = vadd.s32 8, %v1032_v1 }
  0x18 LB: > { %s791_s1 = sshll.u32 %s999_s18, 6  ;;  %s43_s19 = sshra.s32 %s999_s18, 7  ;;  %vm85_vm6 = vcmask 130048   ;;  %v1005_v19 = vmov 1.0   ;;  %v1006_v20 = vmov 0.0   ;;  %s999_s18 = sphi %s1039_s18, %s39_s18  }
  0x19   : > { %s834_s20 = sshll.u32 %s43_s19, 7  ;;  %s1048_s21 = scalar_lea.vmem [#allocation4], %s791_s1 }
  0x1a   : > { %v84_v4 = vld [vmem:[%s1048_s21 + $0x8] sm:$0xff]  ;;  %v83_v5 = vld [vmem:[%s1048_s21] sm:$0xff]  ;;  %s835_s22 = sadd.s32 128, %s834_s20  ;;  %s48_s23 = sand.u32 127, %s999_s18  ;;  %v800_v6 = vld [vmem:[%s1048_s21 + $0x18] sm:$0xff] }
  0x1b   : > { %868 = vmatprep.subr.mxu0 %v84_v4  ;;  %s49_s24 = sadd.s32 %s835_s22, %s48_s23  ;;  %s41_s25 = sld [smem:[#allocation3 + %s999_s18]]  ;;  %v799_v23 = vld [vmem:[%s1048_s21 + $0x10] sm:$0xff]  ;;  %v812_v24 = vld [vmem:[%s1048_s21 + $0x28] sm:$0xff]  ;;  %v811_v25 = vld [vmem:[%s1048_s21 + $0x20] sm:$0xff] }
  0x1c   : > { %869 = vmatpush3.msra.mxu0 %v84_v4  ;;  %s50_s26 = sld [smem:[#allocation3 + %s49_s24]]  ;;  %v824_v26 = vld [vmem:[%s1048_s21 + $0x38] sm:$0xff]  ;;  %v823_v27 = vld [vmem:[%s1048_s21 + $0x30] sm:$0xff]  ;;  %s248_s29 = scalar_lea.vmem [#allocation7], %s791_s1 }
  0x1d   : > { %870 = vmatprep.subr.mxu0 %v83_v5  ;;  %s39_s18 = sadd.s32 1, %s999_s18  }
  0x1e   : > { %871 = vmatpush3.msra.mxu0 %v83_v5  ;;  %p36_p5 = scmp.ge.s32.totalorder %s39_s18, 2  }
  0x1f   : > { %882 = vmatprep.subr.mxu0 %v800_v6  ;;  %s1007_s30 = smov (%p36_p5), [#allocation7]  }
  0x20   :  { %s745_s3 = sshll.u32 (%p36_p5), %s1007_s30, 4  ;;  %s746_s3 = int_to_ptr.vmem [resolvable:$true] %s745_s3 }
  0x21   : > { %s784_s27 = sadd.s32 4294967292, %s41_s25  ;;  %s967_s4 = scalar_lea.vmem (%p36_p5), %s746_s3, 2048 }
  0x22   : > { %s786_s28 = sadd.s32 4294967292, %s50_s26  ;;  %v69_v7 = vstv %s784_s27  ;;  %p968_p6 = scmp.ne.s32.totalorder (%p36_p5), %s746_s3, %s967_s4 }
  0x23   : > { %v52_v8 = vstv %s786_s28  ;;  %v70_v9 = vadd.s32 %v69_v7, %v1034_v2  ;;  %p972_p7 = scmp.lt.s32.totalorder (%p36_p5), %s746_s3, %s746_s3  ;;  %p973_p8 = scmp.lt.s32.totalorder (%p36_p5), %s967_s4, %s967_s4 }
  0x24   : > { %v53_v10 = vadd.s32 %v52_v8, %v1032_v1  ;;  %v54_v11 = vadd.s32 %v52_v8, %v1037_v3 }
  0x25   : > { %vm71_vm0 = vcmp.gt.s32.totalorder %v70_v9, 0  ;;  %p974_p9 = por (%p36_p5), %p973_p8, %p972_p7 }
  0x26   : > { %vm55_vm1 = vcmp.gt.s32.totalorder %v53_v10, 0  ;;  %vm57_vm2 = vcmp.gt.s32.totalorder %v54_v11, 0  ;;  %v72_v12 = vsel %vm71_vm0, %v70_v9, 0 }
  0x27   : > { %v56_v13 = vsel %vm55_vm1, %v53_v10, 0  ;;  %v58_v14 = vsel %vm57_vm2, %v54_v11, 0  ;;  %vm73_vm3 = vcmp.lt.s32.totalorder %v72_v12, 15  ;;  %p975_p10 = pnand (%p36_p5), %p974_p9, %p968_p6 }
  0x28   : > { %vm59_vm4 = vcmp.lt.s32.totalorder %v56_v13, 15  ;;  %vm61_vm5 = vcmp.lt.s32.totalorder %v58_v14, 15  ;;  %v74_v15 = vsel %vm73_vm3, %v72_v12, 15 }
  0x29   : > { %v60_v16 = vsel %vm59_vm4, %v56_v13, 15  ;;  %v62_v17 = vsel %vm61_vm5, %v58_v14, 15  ;;  %vm1059_vm7 = vcmp.eq.s32.totalorder %v1037_v3, %v74_v15  ;;  %vm1083_vm10 = vcmp.eq.s32.totalorder %v1032_v1, %v74_v15 }
  0x2a   : > { %vm63_vm8 = vcmp.eq.s32.totalorder %v1034_v2, %v60_v16  ;;  %vm64_vm9 = vcmp.eq.s32.totalorder %v1034_v2, %v62_v17  ;;  %875 = vmatprep.subr.msk.mxu1 %vm1059_vm7, %v1005_v19 }
  0x2b   : > { %v787_v21 = vsel %vm63_vm8, 1.0, %v1006_v20  ;;  %v788_v22 = vsel %vm64_vm9, 1.0, %v1006_v20  ;;  %876 = vmatpush3.msk.msra.mxu1 %vm1059_vm7, %v1005_v19 }
  0x2c   : > { %872 = vmatprep.mubr.msk.f32.mxu0 %vm85_vm6, %v787_v21  ;;  %877 = vmatprep.subr.msk.mxu1 %vm1083_vm10, %v1005_v19 }
  0x2d   : > { %873 = vmatmul.mubr.msk.f32.vlgmr.msra.gmra.mxu0 %vm85_vm6, %v788_v22  ;;  %878 = vmatpush3.msk.msra.mxu1 %vm1083_vm10, %v1005_v19 }
  0x2e   : > { %883 = vmatpush3.msra.mxu0 %v800_v6  ;;  %886 = vmatprep.mubr.msk.f32.mxu0 %vm85_vm6, %v787_v21 }
  0x2f   : > { %884 = vmatprep.subr.mxu0 %v799_v23  ;;  %889 = vmatprep.subr.msk.mxu1 %vm1059_vm7, %v1005_v19 }
  0x30   : > { %885 = vmatpush3.msra.mxu0 %v799_v23 }
  0x31   : > { %896 = vmatprep.subr.mxu0 %v812_v24  ;;  %887 = vmatmul.mubr.msk.f32.vlgmr.msra.gmra.mxu0 %vm85_vm6, %v788_v22 }
  0x32   : > { %897 = vmatpush3.msra.mxu0 %v812_v24  ;;  %900 = vmatprep.mubr.msk.f32.mxu0 %vm85_vm6, %v787_v21 }
  0x33   : > { %898 = vmatprep.subr.mxu0 %v811_v25 }
  0x34   : > { %899 = vmatpush3.msra.mxu0 %v811_v25 }
  0x35   : > { %910 = vmatprep.subr.mxu0 %v824_v26  ;;  %901 = vmatmul.mubr.msk.f32.vlgmr.msra.gmra.mxu0 %vm85_vm6, %v788_v22 }
  0x36   : > { %911 = vmatpush3.msra.mxu0 %v824_v26  ;;  %914 = vmatprep.mubr.msk.f32.mxu0 %vm85_vm6, %v787_v21 }
  0x37   : > { %912 = vmatprep.subr.mxu0 %v823_v27 }
  0x38   : > { %913 = vmatpush3.msra.mxu0 %v823_v27 }
  0x39   : > { %915 = vmatmul.mubr.msk.f32.vlgmr.msra.gmra.mxu0 %vm85_vm6, %v788_v22 }
  0xed   : > { %v874_v29 = vpop.f32.mrf.mxu0 }
  0xef   : > { %v158_v30 = vpop.f32.mrf.mxu0 }
  0xf0   : > { %879 = vmatprep.mubr.msk.f32.mxu1 %vm85_vm6, %v158_v30 }
  0xf1   : > { %880 = vmatmul.mubr.msk.f32.vlgmr.msra.gmra.mxu1 %vm85_vm6, %v874_v29  ;;  %v888_v31 = vpop.f32.mrf.mxu0 }
  0xf2   : > { %890 = vmatpush3.msk.msra.mxu1 %vm1059_vm7, %v1005_v19 }
  0xf3   : > { %891 = vmatprep.subr.msk.mxu1 %vm1083_vm10, %v1005_v19  ;;  %v321_v32 = vpop.f32.mrf.mxu0 }
  0xf4   : > { %892 = vmatpush3.msk.msra.mxu1 %vm1083_vm10, %v1005_v19  ;;  %893 = vmatprep.mubr.msk.f32.mxu1 %vm85_vm6, %v321_v32 }
  0xf5   : > { %903 = vmatprep.subr.msk.mxu1 %vm1059_vm7, %v1005_v19  ;;  %894 = vmatmul.mubr.msk.f32.vlgmr.msra.gmra.mxu1 %vm85_vm6, %v888_v31  ;;  %v902_v33 = vpop.f32.mrf.mxu0 }
  0xf6   : > { %904 = vmatpush3.msk.msra.mxu1 %vm1059_vm7, %v1005_v19 }
  0xf7   : > { %905 = vmatprep.subr.msk.mxu1 %vm1083_vm10, %v1005_v19  ;;  %v484_v34 = vpop.f32.mrf.mxu0 }
  0xf8   : > { %906 = vmatpush3.msk.msra.mxu1 %vm1083_vm10, %v1005_v19  ;;  %907 = vmatprep.mubr.msk.f32.mxu1 %vm85_vm6, %v484_v34 }
  0xf9   : > { %917 = vmatprep.subr.msk.mxu1 %vm1059_vm7, %v1005_v19  ;;  %908 = vmatmul.mubr.msk.f32.vlgmr.msra.gmra.mxu1 %vm85_vm6, %v902_v33  ;;  %v916_v35 = vpop.f32.mrf.mxu0 }
  0xfa   : > { %918 = vmatpush3.msk.msra.mxu1 %vm1059_vm7, %v1005_v19 }
  0xfb   : > { %919 = vmatprep.subr.msk.mxu1 %vm1083_vm10, %v1005_v19  ;;  %v647_v36 = vpop.f32.mrf.mxu0 }
  0xfc   : > { %920 = vmatpush3.msk.msra.mxu1 %vm1083_vm10, %v1005_v19  ;;  %921 = vmatprep.mubr.msk.f32.mxu1 %vm85_vm6, %v647_v36 }
  0xfd   : > { %922 = vmatmul.mubr.msk.f32.vlgmr.msra.gmra.mxu1 %vm85_vm6, %v916_v35 }
 0x1b1   : > { %v881_v37 = vpop.f32.mrf.mxu1 }
 0x1b2   : > { %250 = vst.msk [vmem:[%s248_s29 + $0x8] sm:$0xff] %vm85_vm6, %v881_v37 }
 0x1b3   : > { %v239_v38 = vpop.f32.mrf.mxu1 }
 0x1b4   : > { %249 = vst.msk [vmem:[%s248_s29] sm:$0xff] %vm85_vm6, %v239_v38 }
 0x1b5   : > { %v895_v39 = vpop.f32.mrf.mxu1 }
 0x1b6   : > { %809 = vst.msk [vmem:[%s248_s29 + $0x18] sm:$0xff] %vm85_vm6, %v895_v39 }
 0x1b7   : > { %v402_v40 = vpop.f32.mrf.mxu1 }
 0x1b8   : > { %808 = vst.msk [vmem:[%s248_s29 + $0x10] sm:$0xff] %vm85_vm6, %v402_v40 }
 0x1b9   : > { %v909_v41 = vpop.f32.mrf.mxu1 }
 0x1ba   : > { %821 = vst.msk [vmem:[%s248_s29 + $0x28] sm:$0xff] %vm85_vm6, %v909_v41 }
 0x1bb   : > { %v565_v42 = vpop.f32.mrf.mxu1 }
 0x1bc   : > { %820 = vst.msk [vmem:[%s248_s29 + $0x20] sm:$0xff] %vm85_vm6, %v565_v42  ;;  %38 = sbr.rel (!%p36_p5) target bundleno = 24 (0x18), region = 43 }
 0x1bd   : > { %v923_v43 = vpop.f32.mrf.mxu1 }
 0x1be   : > { %833 = vst.msk [vmem:[%s248_s29 + $0x38] sm:$0xff] %vm85_vm6, %v923_v43 }
 0x1bf   : > { %v728_v44 = vpop.f32.mrf.mxu1 }
 0x1c0   : > { %832 = vst.msk [vmem:[%s248_s29 + $0x30] sm:$0xff] %vm85_vm6, %v728_v44 }
 0x1c1   :  { %978 = shalt.err (!%p975_p10)
}
 0x1c2   :  { %751 = dma.vmem_to_hbm [thread:$0]  %s746_s3, 2048, %s1144_s2, [#allocation6], %s1003_s15, %s1003_s15, %s1004_s16  }
 0x1c3   :  { %995 = dma.done.wait [#allocation6], 2048  }
 0x1c4   :  { %996 = vsyncadd [#allocation6], 4294965248 }
 0x1c5   :  { %755 = vsyncpa [#allocation5], 1 }
 0x1c6   :  { %756 = vsyncpa [#allocation6], 1 }

</bundles_post_ra>
